<compile_context>
chip_gen: v6e
topology: v6e:2x2x1
jax: 0.10.0
libtpu: 0.0.40
codegen_flags: <defaults>
</compile_context>

<pallas_src>
import functools

import jax
import jax.numpy as jnp
from jax.experimental import pallas as pl
from jax.experimental.pallas import tpu as pltpu

BN_EPS = 1e-5  # PyTorch BatchNorm2d default


# --------------------------------------------------------------------------- kernels

def _stats_kernel(g_ref, x_ref, wg_ref, wx_ref, stats_ref, *, hw, l_tile):
    """Pass 1: per-batch per-channel [sum(g1), sum(g1^2), sum(x1), sum(x1^2)]."""
    li = pl.program_id(1)

    @pl.when(li == 0)
    def _():
        stats_ref[...] = jnp.zeros_like(stats_ref)

    g = g_ref[0]                                     # (F_l, TL), input dtype
    x = x_ref[0]                                     # (F_g, TL)
    g1 = jnp.dot(wg_ref[...], g, preferred_element_type=jnp.float32)   # (F_int, TL)
    x1 = jnp.dot(wx_ref[...], x, preferred_element_type=jnp.float32)

    if hw % l_tile != 0:                             # mask the ragged last tile
        lane = jax.lax.broadcasted_iota(jnp.int32, g1.shape, 1)
        valid = lane < (hw - li * l_tile)
        g1 = jnp.where(valid, g1, 0.0)
        x1 = jnp.where(valid, x1, 0.0)

    # Single lane-dense (F_int, 4) accumulate instead of four width-1 slices.
    col = jnp.concatenate(
        [jnp.sum(g1, axis=-1, keepdims=True),
         jnp.sum(g1 * g1, axis=-1, keepdims=True),
         jnp.sum(x1, axis=-1, keepdims=True),
         jnp.sum(x1 * x1, axis=-1, keepdims=True)], axis=-1)            # (F_int, 4)
    stats_ref[0] += col


def _psi_kernel(g_ref, x_ref, wg_ref, wx_ref, sh_ref, wp_ref,
                p_ref, pstats_ref, *, hw, l_tile, psi_mxu):
    """Pass 2: p_raw = Wp @ relu(wg'@g + wx'@x + shift); store p_raw + its stats.

    BN scale is pre-folded into wg'/wx'; the two BN shifts collapse to one additive
    per-channel vector, so the body is dot + dot + add + relu + project.
    """
    li = pl.program_id(1)

    @pl.when(li == 0)
    def _():
        pstats_ref[...] = jnp.zeros_like(pstats_ref)

    g = g_ref[0]
    x = x_ref[0]
    g1 = jnp.dot(wg_ref[...], g, preferred_element_type=jnp.float32)
    x1 = jnp.dot(wx_ref[...], x, preferred_element_type=jnp.float32)

    h = jnp.maximum(g1 + x1 + sh_ref[...], 0.0)      # (F_int, TL), f32

    if psi_mxu:
        # F_int >= 128: MXU dot (1-row output padded to 8 sublanes).
        p = jnp.dot(wp_ref[...], h, preferred_element_type=jnp.float32)    # (1, TL)
    else:
        # Small F_int: VPU broadcast-multiply + sublane reduction beats M=1 MXU.
        p = jnp.sum(wp_ref[...] * h, axis=0, keepdims=True)                # (1, TL)

    p_ref[0] = p.astype(p_ref.dtype)                 # round-trips HBM in x.dtype

    pm = p
    if hw % l_tile != 0:
        lane = jax.lax.broadcasted_iota(jnp.int32, p.shape, 1)
        pm = jnp.where(lane < (hw - li * l_tile), p, 0.0)

    pcol = jnp.concatenate([jnp.sum(pm, axis=-1, keepdims=True),
                            jnp.sum(pm * pm, axis=-1, keepdims=True)], axis=-1)  # (1,2)
    pstats_ref[0] += pcol


def _gate_kernel(x_ref, p_ref, ab_ref, out_ref):
    """Pass 3: out = x * sigmoid(scale*p + shift), multiply in f32."""
    x = x_ref[0].astype(jnp.float32)                 # (F_g, TL)
    p = p_ref[0].astype(jnp.float32)                 # (1, TL)
    psi = jax.nn.sigmoid(p * ab_ref[0] + ab_ref[1])  # psi scale/shift from SMEM
    out_ref[0] = (x * psi).astype(out_ref.dtype)


# --------------------------------------------------------------------------- wrapper

def _vmem_caps():
    """(lane-tile budget, vmem_limit ceiling) derived from physical VMEM."""
    try:
        info = pltpu.get_tpu_info()
        cap = int(getattr(info, "vmem_capacity_bytes", 64 * 1024 * 1024))
    except Exception:
        cap = 64 * 1024 * 1024                       # conservative: safe on every gen
    cap = max(cap, 32 * 1024 * 1024)
    tile_budget = int(0.40 * cap)                    # ~25 MiB on v7x, ~51 MiB on v5e/v6e
    limit_ceiling = int(0.80 * cap)                  # leave headroom for Mosaic scratch
    return tile_budget, limit_ceiling


def _choose_l_tile(hw, f_l, f_g, f_int, in_bytes, vmem_budget):
    """Largest lane tile (multiple of 128) whose per-step footprint fits the budget."""
    per_lane = (2 * (f_l + 2 * f_g) * in_bytes      # double-buffered g/x/out tiles
                + 3 * f_int * 4                     # live f32 intermediates (acc + h)
                + 16)
    tl = max(128, min(8192, (vmem_budget // per_lane) // 128 * 128))
    if hw <= tl:
        return hw                                    # single tile == full lane dim
    # Prefer an exact divisor, but never sacrifice more than half the tile for it.
    min_div = max(512, tl // 2)
    for cand in range(tl, min_div - 1, -128):
        if hw % cand == 0:
            return cand
    return tl                                        # ragged last tile (masked in-kernel)


def _compiler_params(dim_sems, f_l, f_g, f_int, tl, in_bytes, limit_ceiling):
    est = ((2 * (f_l + 2 * f_g) * in_bytes + 3 * f_int * 4) * tl
           + (f_int * (f_l + f_g) + 8 * f_int) * 4 + (1 << 20))
    limit = int(min(max(2 * est, 32 * 1024 * 1024), limit_ceiling))
    return pltpu.CompilerParams(dimension_semantics=dim_sems, vmem_limit_bytes=limit)


def init_params(key, F_g, F_l, F_int):
    ks = jax.random.split(key, 3)
    scale = 0.1
    # Conv biases intentionally omitted: training-mode BatchNorm subtracts the
    # per-channel batch mean, which exactly cancels any bias added by the 1x1 conv.
    # TODO(synk): if the module is ever used in eval() mode (running stats), the
    # conv biases must be reinstated and BN folded with running mean/var instead.
    return {
        "wg": scale * jax.random.normal(ks[0], (F_int, F_l), jnp.float32),
        "gg": jnp.ones((F_int, 1), jnp.float32),
        "betag": jnp.zeros((F_int, 1), jnp.float32),
        "wx": scale * jax.random.normal(ks[1], (F_int, F_g), jnp.float32),
        "gx": jnp.ones((F_int, 1), jnp.float32),
        "betax": jnp.zeros((F_int, 1), jnp.float32),
        "wp": scale * jax.random.normal(ks[2], (1, F_int), jnp.float32),
        "gp": jnp.ones((1, 1), jnp.float32),
        "betap": jnp.zeros((1, 1), jnp.float32),
    }


def attn_block(g, x, params):
    """g: (B, F_l, H, W), x: (B, F_g, H, W) in NCHW.  Returns (B, F_g, H, W)."""
    B, F_l, H, W = g.shape
    _, F_g, _, _ = x.shape
    HW = H * W
    F_int = params["wg"].shape[0]

    dt = x.dtype
    in_bytes = jnp.dtype(dt).itemsize

    # Free layout changes only (reshape of trailing dims): NCHW -> (B, C, H*W).
    g3 = g.reshape(B, F_l, HW)
    x3 = x.reshape(B, F_g, HW)

    # MXU takes the input dtype directly (bf16 stays bf16); accumulation is f32.
    wg = params["wg"].astype(dt)
    wx = params["wx"].astype(dt)

    tile_budget, limit_ceiling = _vmem_caps()
    TL = _choose_l_tile(HW, F_l, F_g, F_int, in_bytes, tile_budget)
    nL = pl.cdiv(HW, TL)
    grid = (B, nL)
    L = B * HW

    g_spec = pl.BlockSpec((1, F_l, TL), lambda b, l: (b, 0, l))
    x_spec = pl.BlockSpec((1, F_g, TL), lambda b, l: (b, 0, l))
    wg_spec = pl.BlockSpec((F_int, F_l), lambda b, l: (0, 0))
    wx_spec = pl.BlockSpec((F_int, F_g), lambda b, l: (0, 0))
    p_spec = pl.BlockSpec((1, 1, TL), lambda b, l: (b, 0, l))

    flops_gx = 2 * L * F_int * (F_l + F_g)
    bytes_gx = (g3.size + x3.size + wg.size + wx.size) * in_bytes

    # ---- pass 1: per-batch per-channel sum / sum^2 of the two 1x1-conv outputs ----
    # B axis is "parallel" (v7x megacore); each b owns its own stats slab, so there
    # is no cross-core race.  The tiny reduction over B happens in JAX below.
    stats_b = pl.pallas_call(
        functools.partial(_stats_kernel, hw=HW, l_tile=TL),
        out_shape=jax.ShapeDtypeStruct((B, F_int, 4), jnp.float32),
        grid=grid,
        in_specs=[g_spec, x_spec, wg_spec, wx_spec],
        out_specs=pl.BlockSpec((1, F_int, 4), lambda b, l: (b, 0, 0)),
        compiler_params=_compiler_params(("parallel", "arbitrary"),
                                         F_l, F_g, F_int, TL, in_bytes, limit_ceiling),
        cost_estimate=pl.CostEstimate(
            flops=int(flops_gx + 6 * F_int * L), transcendentals=0,
            bytes_accessed=int(bytes_gx + B * F_int * 16)),
    )(g3, x3, wg, wx)

    stats = jnp.sum(stats_b, axis=0)                 # (F_int, 4)

    # Fold each BN into the weights (per-channel scale) + one additive shift.
    n = float(L)

    def fold(s, ss, gamma, beta):
        mean = s / n
        var = jnp.maximum(ss / n - mean * mean, 0.0)   # one-pass var, clamped >= 0
        scale = gamma * jax.lax.rsqrt(var + BN_EPS)
        return scale, beta - scale * mean

    sc_g, sh_g = fold(stats[:, 0], stats[:, 1], params["gg"][:, 0], params["betag"][:, 0])
    sc_x, sh_x = fold(stats[:, 2], stats[:, 3], params["gx"][:, 0], params["betax"][:, 0])
    wg2 = (sc_g[:, None] * params["wg"]).astype(dt)            # BN scale folded in
    wx2 = (sc_x[:, None] * params["wx"]).astype(dt)
    shift = (sh_g + sh_x).reshape(F_int, 1).astype(jnp.float32)  # single additive shift

    psi_mxu = F_int >= 128
    wp = params["wp"].astype(dt)
    wp_arg = wp if psi_mxu else wp.reshape(F_int, 1)

    # ---- pass 2: psi pre-activation + its per-batch stats -------------------------
    p_raw, pstats_b = pl.pallas_call(
        functools.partial(_psi_kernel, hw=HW, l_tile=TL, psi_mxu=psi_mxu),
        out_shape=(jax.ShapeDtypeStruct((B, 1, HW), dt),
                   jax.ShapeDtypeStruct((B, 1, 2), jnp.float32)),
        grid=grid,
        in_specs=[g_spec, x_spec, wg_spec, wx_spec,
                  pl.BlockSpec((F_int, 1), lambda b, l: (0, 0)),
                  pl.BlockSpec(wp_arg.shape, lambda b, l: (0, 0))],
        out_specs=(p_spec, pl.BlockSpec((1, 1, 2), lambda b, l: (b, 0, 0))),
        compiler_params=_compiler_params(("parallel", "arbitrary"),
                                         F_l, F_g, F_int, TL, in_bytes, limit_ceiling),
        cost_estimate=pl.CostEstimate(
            flops=int(flops_gx + 6 * F_int * L + 4 * L), transcendentals=0,
            bytes_accessed=int(bytes_gx + L * in_bytes + F_int * 8 + B * 8)),
    )(g3, x3, wg2, wx2, shift, wp_arg)

    pstats = jnp.sum(pstats_b, axis=0)               # (1, 2)
    mean_p = pstats[0, 0] / n
    var_p = jnp.maximum(pstats[0, 1] / n - mean_p * mean_p, 0.0)
    scale_p = params["gp"][0, 0] * jax.lax.rsqrt(var_p + BN_EPS)
    shift_p = params["betap"][0, 0] - scale_p * mean_p
    psi_ab = jnp.stack([scale_p, shift_p]).astype(jnp.float32)     # (2,) -> SMEM

    # ---- pass 3: sigmoid + gate (fully parallel over both grid axes) --------------
    out3 = pl.pallas_call(
        _gate_kernel,
        out_shape=jax.ShapeDtypeStruct((B, F_g, HW), dt),
        grid=grid,
        in_specs=[x_spec, p_spec,
                  pl.BlockSpec(memory_space=pltpu.MemorySpace.SMEM)],
        out_specs=pl.BlockSpec((1, F_g, TL), lambda b, l: (b, 0, l)),
        compiler_params=_compiler_params(("parallel", "parallel"),
                                         F_l, F_g, F_int, TL, in_bytes, limit_ceiling),
        cost_estimate=pl.CostEstimate(
            flops=int((2 * F_g + 3) * L), transcendentals=int(L),
            bytes_accessed=int(2 * x3.size * in_bytes + L * in_bytes)),
    )(x3, p_raw, psi_ab)

    return out3.reshape(B, F_g, H, W)


# --------------------------------------------------------------------------- reference

def attn_block_reference(g, x, params):
    B, F_l, H, W = g.shape
    _, F_g, _, _ = x.shape
    gm = g.reshape(B, F_l, -1).astype(jnp.float32)
    xm = x.reshape(B, F_g, -1).astype(jnp.float32)

    def bn(y, gamma, beta):
        mu = jnp.mean(y, axis=(0, 2), keepdims=True)
        var = jnp.mean((y - mu) ** 2, axis=(0, 2), keepdims=True)
        return (gamma.reshape(1, -1, 1) * (y - mu) * jax.lax.rsqrt(var + BN_EPS)
                + beta.reshape(1, -1, 1))

    g1 = bn(jnp.einsum("oc,bcl->bol", params["wg"], gm),
            params["gg"][:, 0], params["betag"][:, 0])
    x1 = bn(jnp.einsum("oc,bcl->bol", params["wx"], xm),
            params["gx"][:, 0], params["betax"][:, 0])
    h = jnp.maximum(g1 + x1, 0.0)
    p = bn(jnp.einsum("oc,bcl->bol", params["wp"], h),
           params["gp"][:, 0], params["betap"][:, 0])
    psi = jax.nn.sigmoid(p)
    return (xm * psi).reshape(B, F_g, H, W).astype(x.dtype)


if __name__ == "__main__":
    B, F_g, F_l, F_int, H, W = 2, 4, 4, 8, 16, 16

    key = jax.random.PRNGKey(0)
    k_g, k_x, k_p = jax.random.split(key, 3)
    g = jax.random.normal(k_g, (B, F_l, H, W), jnp.float32)
    x = jax.random.normal(k_x, (B, F_g, H, W), jnp.float32)
    params = init_params(k_p, F_g, F_l, F_int)

    out = jax.jit(attn_block)(g, x, params)
    jax.block_until_ready(out)
    assert out.shape == (B, F_g, H, W)

    ref = attn_block_reference(g, x, params)
    assert jnp.allclose(out, ref, rtol=1e-3, atol=1e-3), \
        f"max abs err {float(jnp.max(jnp.abs(out - ref)))}"

    print("KERNEL_OK")
</pallas_src>

<mosaic_0001>
module attributes {stable_mosaic.version = 11 : i64} {
  func.func @_psi_kernel(%arg0: i32, %arg1: i32, %arg2: memref<1x4x256xf32, #tpu.memory_space<vmem>>, %arg3: memref<1x4x256xf32, #tpu.memory_space<vmem>>, %arg4: memref<8x4xf32, #tpu.memory_space<vmem>>, %arg5: memref<8x4xf32, #tpu.memory_space<vmem>>, %arg6: memref<8x1xf32, #tpu.memory_space<vmem>>, %arg7: memref<8x1xf32, #tpu.memory_space<vmem>>, %arg8: memref<1x1x256xf32, #tpu.memory_space<vmem>>, %arg9: memref<1x1x2xf32, #tpu.memory_space<vmem>>) attributes {dimension_semantics = [#tpu.dimension_semantics<parallel>, #tpu.dimension_semantics<arbitrary>], iteration_bounds = array<i64: 2, 1>, scalar_prefetch = 0 : i64, scratch_operands = 0 : i64, tpu.core_type = #tpu.core_type<tc>, window_params = [{transform_indices = @transform_0, window_bounds = array<i64: 1, 4, 256>}, {transform_indices = @transform_1, window_bounds = array<i64: 1, 4, 256>}, {pipeline_mode = #tpu.pipeline_mode<synchronous>, transform_indices = @transform_2, window_bounds = array<i64: 8, 4>}, {pipeline_mode = #tpu.pipeline_mode<synchronous>, transform_indices = @transform_3, window_bounds = array<i64: 8, 4>}, {pipeline_mode = #tpu.pipeline_mode<synchronous>, transform_indices = @transform_4, window_bounds = array<i64: 8, 1>}, {pipeline_mode = #tpu.pipeline_mode<synchronous>, transform_indices = @transform_5, window_bounds = array<i64: 8, 1>}, {transform_indices = @transform_6, window_bounds = array<i64: 1, 1, 256>}, {transform_indices = @transform_7, window_bounds = array<i64: 1, 1, 2>}]} {
    %c0_i32 = arith.constant 0 : i32
    %0 = arith.cmpi eq, %arg1, %c0_i32 : i32
    %1 = arith.extui %0 : i1 to i32
    %c0_i32_0 = arith.constant 0 : i32
    %2 = arith.cmpi ne, %1, %c0_i32_0 : i32
    scf.if %2 {
      %cst_28 = arith.constant 0.000000e+00 : f32
      %37 = vector.broadcast %cst_28 : f32 to vector<1x1x2xf32>
      %c0_29 = arith.constant 0 : index
      %c0_30 = arith.constant 0 : index
      %c0_31 = arith.constant 0 : index
      %38 = vector.load %arg9[%c0_29, %c0_30, %c0_31] : memref<1x1x2xf32, #tpu.memory_space<vmem>>, vector<1x1x2xf32>
      tpu.vector_store %arg9[%c0_29, %c0_30, %c0_31], %37 {strides = array<i32>} : memref<1x1x2xf32, #tpu.memory_space<vmem>>, vector<1x1x2xf32>,
    } else {
    }
    %c0 = arith.constant 0 : index
    %c0_1 = arith.constant 0 : index
    %c0_2 = arith.constant 0 : index
    %3 = vector.load %arg2[%c0, %c0_1, %c0_2] : memref<1x4x256xf32, #tpu.memory_space<vmem>>, vector<1x4x256xf32>
    %4 = vector.shape_cast %3 : vector<1x4x256xf32> to vector<4x256xf32>
    %c0_3 = arith.constant 0 : index
    %c0_4 = arith.constant 0 : index
    %c0_5 = arith.constant 0 : index
    %5 = vector.load %arg3[%c0_3, %c0_4, %c0_5] : memref<1x4x256xf32, #tpu.memory_space<vmem>>, vector<1x4x256xf32>
    %6 = vector.shape_cast %5 : vector<1x4x256xf32> to vector<4x256xf32>
    %c0_6 = arith.constant 0 : index
    %c0_7 = arith.constant 0 : index
    %7 = vector.load %arg4[%c0_6, %c0_7] : memref<8x4xf32, #tpu.memory_space<vmem>>, vector<8x4xf32>
    %cst = arith.constant dense<0.000000e+00> : vector<8x256xf32>
    %8 = tpu.matmul %7, %4, %cst {dimension_numbers = #tpu.dot_dimension_numbers<[1], [0], [0], [1], [0, 0, 1, 1], [], []>} : vector<8x4xf32>, vector<4x256xf32>, vector<8x256xf32> -> vector<8x256xf32>
    %c0_8 = arith.constant 0 : index
    %c0_9 = arith.constant 0 : index
    %9 = vector.load %arg5[%c0_8, %c0_9] : memref<8x4xf32, #tpu.memory_space<vmem>>, vector<8x4xf32>
    %cst_10 = arith.constant dense<0.000000e+00> : vector<8x256xf32>
    %10 = tpu.matmul %9, %6, %cst_10 {dimension_numbers = #tpu.dot_dimension_numbers<[1], [0], [0], [1], [0, 0, 1, 1], [], []>} : vector<8x4xf32>, vector<4x256xf32>, vector<8x256xf32> -> vector<8x256xf32>
    %11 = arith.addf %8, %10 : vector<8x256xf32>
    %c0_11 = arith.constant 0 : index
    %c0_12 = arith.constant 0 : index
    %12 = vector.load %arg6[%c0_11, %c0_12] : memref<8x1xf32, #tpu.memory_space<vmem>>, vector<8x1xf32>
    %13 = vector.broadcast %12 : vector<8x1xf32> to vector<8x256xf32>
    %14 = arith.addf %11, %13 : vector<8x256xf32>
    %cst_13 = arith.constant 0.000000e+00 : f32
    %15 = vector.broadcast %cst_13 : f32 to vector<8x256xf32>
    %16 = arith.maximumf %14, %15 : vector<8x256xf32>
    %c0_14 = arith.constant 0 : index
    %c0_15 = arith.constant 0 : index
    %17 = vector.load %arg7[%c0_14, %c0_15] : memref<8x1xf32, #tpu.memory_space<vmem>>, vector<8x1xf32>
    %18 = vector.broadcast %17 : vector<8x1xf32> to vector<8x256xf32>
    %19 = arith.mulf %18, %16 : vector<8x256xf32>
    %cst_16 = arith.constant dense<0.000000e+00> : vector<256xf32>
    %20 = vector.multi_reduction <add>, %19, %cst_16 [0] : vector<8x256xf32> to vector<256xf32>
    %21 = vector.shape_cast %20 : vector<256xf32> to vector<1x256xf32>
    %c0_17 = arith.constant 0 : index
    %c0_18 = arith.constant 0 : index
    %c0_19 = arith.constant 0 : index
    %22 = vector.load %arg8[%c0_17, %c0_18, %c0_19] : memref<1x1x256xf32, #tpu.memory_space<vmem>>, vector<1x1x256xf32>
    %23 = vector.shape_cast %22 : vector<1x1x256xf32> to vector<1x256xf32>
    %24 = vector.shape_cast %21 : vector<1x256xf32> to vector<1x1x256xf32>
    tpu.vector_store %arg8[%c0_17, %c0_18, %c0_19], %24 {strides = array<i32>} : memref<1x1x256xf32, #tpu.memory_space<vmem>>, vector<1x1x256xf32>,
    %cst_20 = arith.constant dense<0.000000e+00> : vector<1xf32>
    %25 = vector.multi_reduction <add>, %21, %cst_20 [1] : vector<1x256xf32> to vector<1xf32>
    %26 = vector.shape_cast %25 : vector<1xf32> to vector<1x1xf32>
    %27 = arith.mulf %21, %21 : vector<1x256xf32>
    %cst_21 = arith.constant dense<0.000000e+00> : vector<1xf32>
    %28 = vector.multi_reduction <add>, %27, %cst_21 [1] : vector<1x256xf32> to vector<1xf32>
    %29 = vector.shape_cast %28 : vector<1xf32> to vector<1x1xf32>
    %30 = tpu.concatenate %26, %29 in 1 : vector<1x1xf32>, vector<1x1xf32> -> vector<1x2xf32>
    %c0_22 = arith.constant 0 : index
    %c0_23 = arith.constant 0 : index
    %c0_24 = arith.constant 0 : index
    %31 = vector.load %arg9[%c0_22, %c0_23, %c0_24] : memref<1x1x2xf32, #tpu.memory_space<vmem>>, vector<1x1x2xf32>
    %32 = vector.shape_cast %31 : vector<1x1x2xf32> to vector<1x2xf32>
    %33 = arith.addf %32, %30 : vector<1x2xf32>
    %c0_25 = arith.constant 0 : index
    %c0_26 = arith.constant 0 : index
    %c0_27 = arith.constant 0 : index
    %34 = vector.load %arg9[%c0_25, %c0_26, %c0_27] : memref<1x1x2xf32, #tpu.memory_space<vmem>>, vector<1x1x2xf32>
    %35 = vector.shape_cast %34 : vector<1x1x2xf32> to vector<1x2xf32>
    %36 = vector.shape_cast %33 : vector<1x2xf32> to vector<1x1x2xf32>
    tpu.vector_store %arg9[%c0_25, %c0_26, %c0_27], %36 {strides = array<i32>} : memref<1x1x2xf32, #tpu.memory_space<vmem>>, vector<1x1x2xf32>,
    return
  }
  func.func @transform_0(%arg0: i32, %arg1: i32) -> (i32, i32, i32) {
    %c0_i32 = arith.constant 0 : i32
    %c0_i32_0 = arith.constant 0 : i32
    return %arg0, %c0_i32, %arg1 : i32, i32, i32
  }
  func.func @transform_1(%arg0: i32, %arg1: i32) -> (i32, i32, i32) {
    %c0_i32 = arith.constant 0 : i32
    %c0_i32_0 = arith.constant 0 : i32
    return %arg0, %c0_i32, %arg1 : i32, i32, i32
  }
  func.func @transform_2(%arg0: i32, %arg1: i32) -> (i32, i32) {
    %c0_i32 = arith.constant 0 : i32
    %c0_i32_0 = arith.constant 0 : i32
    %c0_i32_1 = arith.constant 0 : i32
    return %c0_i32, %c0_i32_0 : i32, i32
  }
  func.func @transform_3(%arg0: i32, %arg1: i32) -> (i32, i32) {
    %c0_i32 = arith.constant 0 : i32
    %c0_i32_0 = arith.constant 0 : i32
    %c0_i32_1 = arith.constant 0 : i32
    return %c0_i32, %c0_i32_0 : i32, i32
  }
  func.func @transform_4(%arg0: i32, %arg1: i32) -> (i32, i32) {
    %c0_i32 = arith.constant 0 : i32
    %c0_i32_0 = arith.constant 0 : i32
    %c0_i32_1 = arith.constant 0 : i32
    return %c0_i32, %c0_i32_0 : i32, i32
  }
  func.func @transform_5(%arg0: i32, %arg1: i32) -> (i32, i32) {
    %c0_i32 = arith.constant 0 : i32
    %c0_i32_0 = arith.constant 0 : i32
    %c0_i32_1 = arith.constant 0 : i32
    return %c0_i32, %c0_i32_0 : i32, i32
  }
  func.func @transform_6(%arg0: i32, %arg1: i32) -> (i32, i32, i32) {
    %c0_i32 = arith.constant 0 : i32
    %c0_i32_0 = arith.constant 0 : i32
    return %arg0, %c0_i32, %arg1 : i32, i32, i32
  }
  func.func @transform_7(%arg0: i32, %arg1: i32) -> (i32, i32, i32) {
    %c0_i32 = arith.constant 0 : i32
    %c0_i32_0 = arith.constant 0 : i32
    %c0_i32_1 = arith.constant 0 : i32
    return %arg0, %c0_i32, %c0_i32_0 : i32, i32, i32
  }
}

module attributes {stable_mosaic.version = 11 : i64} {
  func.func @_stats_kernel(%arg0: i32, %arg1: i32, %arg2: memref<1x4x256xf32, #tpu.memory_space<vmem>>, %arg3: memref<1x4x256xf32, #tpu.memory_space<vmem>>, %arg4: memref<8x4xf32, #tpu.memory_space<vmem>>, %arg5: memref<8x4xf32, #tpu.memory_space<vmem>>, %arg6: memref<1x8x4xf32, #tpu.memory_space<vmem>>) attributes {dimension_semantics = [#tpu.dimension_semantics<parallel>, #tpu.dimension_semantics<arbitrary>], iteration_bounds = array<i64: 2, 1>, scalar_prefetch = 0 : i64, scratch_operands = 0 : i64, tpu.core_type = #tpu.core_type<tc>, window_params = [{transform_indices = @transform_0, window_bounds = array<i64: 1, 4, 256>}, {transform_indices = @transform_1, window_bounds = array<i64: 1, 4, 256>}, {pipeline_mode = #tpu.pipeline_mode<synchronous>, transform_indices = @transform_2, window_bounds = array<i64: 8, 4>}, {pipeline_mode = #tpu.pipeline_mode<synchronous>, transform_indices = @transform_3, window_bounds = array<i64: 8, 4>}, {transform_indices = @transform_4, window_bounds = array<i64: 1, 8, 4>}]} {
    %c0_i32 = arith.constant 0 : i32
    %0 = arith.cmpi eq, %arg1, %c0_i32 : i32
    %1 = arith.extui %0 : i1 to i32
    %c0_i32_0 = arith.constant 0 : i32
    %2 = arith.cmpi ne, %1, %c0_i32_0 : i32
    scf.if %2 {
      %cst_21 = arith.constant 0.000000e+00 : f32
      %28 = vector.broadcast %cst_21 : f32 to vector<1x8x4xf32>
      %c0_22 = arith.constant 0 : index
      %c0_23 = arith.constant 0 : index
      %c0_24 = arith.constant 0 : index
      %29 = vector.load %arg6[%c0_22, %c0_23, %c0_24] : memref<1x8x4xf32, #tpu.memory_space<vmem>>, vector<1x8x4xf32>
      tpu.vector_store %arg6[%c0_22, %c0_23, %c0_24], %28 {strides = array<i32>} : memref<1x8x4xf32, #tpu.memory_space<vmem>>, vector<1x8x4xf32>,
    } else {
    }
    %c0 = arith.constant 0 : index
    %c0_1 = arith.constant 0 : index
    %c0_2 = arith.constant 0 : index
    %3 = vector.load %arg2[%c0, %c0_1, %c0_2] : memref<1x4x256xf32, #tpu.memory_space<vmem>>, vector<1x4x256xf32>
    %4 = vector.shape_cast %3 : vector<1x4x256xf32> to vector<4x256xf32>
    %c0_3 = arith.constant 0 : index
    %c0_4 = arith.constant 0 : index
    %c0_5 = arith.constant 0 : index
    %5 = vector.load %arg3[%c0_3, %c0_4, %c0_5] : memref<1x4x256xf32, #tpu.memory_space<vmem>>, vector<1x4x256xf32>
    %6 = vector.shape_cast %5 : vector<1x4x256xf32> to vector<4x256xf32>
    %c0_6 = arith.constant 0 : index
    %c0_7 = arith.constant 0 : index
    %7 = vector.load %arg4[%c0_6, %c0_7] : memref<8x4xf32, #tpu.memory_space<vmem>>, vector<8x4xf32>
    %cst = arith.constant dense<0.000000e+00> : vector<8x256xf32>
    %8 = tpu.matmul %7, %4, %cst {dimension_numbers = #tpu.dot_dimension_numbers<[1], [0], [0], [1], [0, 0, 1, 1], [], []>} : vector<8x4xf32>, vector<4x256xf32>, vector<8x256xf32> -> vector<8x256xf32>
    %c0_8 = arith.constant 0 : index
    %c0_9 = arith.constant 0 : index
    %9 = vector.load %arg5[%c0_8, %c0_9] : memref<8x4xf32, #tpu.memory_space<vmem>>, vector<8x4xf32>
    %cst_10 = arith.constant dense<0.000000e+00> : vector<8x256xf32>
    %10 = tpu.matmul %9, %6, %cst_10 {dimension_numbers = #tpu.dot_dimension_numbers<[1], [0], [0], [1], [0, 0, 1, 1], [], []>} : vector<8x4xf32>, vector<4x256xf32>, vector<8x256xf32> -> vector<8x256xf32>
    %cst_11 = arith.constant dense<0.000000e+00> : vector<8xf32>
    %11 = vector.multi_reduction <add>, %8, %cst_11 [1] : vector<8x256xf32> to vector<8xf32>
    %12 = vector.shape_cast %11 : vector<8xf32> to vector<8x1xf32>
    %13 = arith.mulf %8, %8 : vector<8x256xf32>
    %cst_12 = arith.constant dense<0.000000e+00> : vector<8xf32>
    %14 = vector.multi_reduction <add>, %13, %cst_12 [1] : vector<8x256xf32> to vector<8xf32>
    %15 = vector.shape_cast %14 : vector<8xf32> to vector<8x1xf32>
    %cst_13 = arith.constant dense<0.000000e+00> : vector<8xf32>
    %16 = vector.multi_reduction <add>, %10, %cst_13 [1] : vector<8x256xf32> to vector<8xf32>
    %17 = vector.shape_cast %16 : vector<8xf32> to vector<8x1xf32>
    %18 = arith.mulf %10, %10 : vector<8x256xf32>
    %cst_14 = arith.constant dense<0.000000e+00> : vector<8xf32>
    %19 = vector.multi_reduction <add>, %18, %cst_14 [1] : vector<8x256xf32> to vector<8xf32>
    %20 = vector.shape_cast %19 : vector<8xf32> to vector<8x1xf32>
    %21 = tpu.concatenate %12, %15, %17, %20 in 1 : vector<8x1xf32>, vector<8x1xf32>, vector<8x1xf32>, vector<8x1xf32> -> vector<8x4xf32>
    %c0_15 = arith.constant 0 : index
    %c0_16 = arith.constant 0 : index
    %c0_17 = arith.constant 0 : index
    %22 = vector.load %arg6[%c0_15, %c0_16, %c0_17] : memref<1x8x4xf32, #tpu.memory_space<vmem>>, vector<1x8x4xf32>
    %23 = vector.shape_cast %22 : vector<1x8x4xf32> to vector<8x4xf32>
    %24 = arith.addf %23, %21 : vector<8x4xf32>
    %c0_18 = arith.constant 0 : index
    %c0_19 = arith.constant 0 : index
    %c0_20 = arith.constant 0 : index
    %25 = vector.load %arg6[%c0_18, %c0_19, %c0_20] : memref<1x8x4xf32, #tpu.memory_space<vmem>>, vector<1x8x4xf32>
    %26 = vector.shape_cast %25 : vector<1x8x4xf32> to vector<8x4xf32>
    %27 = vector.shape_cast %24 : vector<8x4xf32> to vector<1x8x4xf32>
    tpu.vector_store %arg6[%c0_18, %c0_19, %c0_20], %27 {strides = array<i32>} : memref<1x8x4xf32, #tpu.memory_space<vmem>>, vector<1x8x4xf32>,
    return
  }
  func.func @transform_0(%arg0: i32, %arg1: i32) -> (i32, i32, i32) {
    %c0_i32 = arith.constant 0 : i32
    %c0_i32_0 = arith.constant 0 : i32
    return %arg0, %c0_i32, %arg1 : i32, i32, i32
  }
  func.func @transform_1(%arg0: i32, %arg1: i32) -> (i32, i32, i32) {
    %c0_i32 = arith.constant 0 : i32
    %c0_i32_0 = arith.constant 0 : i32
    return %arg0, %c0_i32, %arg1 : i32, i32, i32
  }
  func.func @transform_2(%arg0: i32, %arg1: i32) -> (i32, i32) {
    %c0_i32 = arith.constant 0 : i32
    %c0_i32_0 = arith.constant 0 : i32
    %c0_i32_1 = arith.constant 0 : i32
    return %c0_i32, %c0_i32_0 : i32, i32
  }
  func.func @transform_3(%arg0: i32, %arg1: i32) -> (i32, i32) {
    %c0_i32 = arith.constant 0 : i32
    %c0_i32_0 = arith.constant 0 : i32
    %c0_i32_1 = arith.constant 0 : i32
    return %c0_i32, %c0_i32_0 : i32, i32
  }
  func.func @transform_4(%arg0: i32, %arg1: i32) -> (i32, i32, i32) {
    %c0_i32 = arith.constant 0 : i32
    %c0_i32_0 = arith.constant 0 : i32
    %c0_i32_1 = arith.constant 0 : i32
    return %arg0, %c0_i32, %c0_i32_0 : i32, i32, i32
  }
}

module attributes {stable_mosaic.version = 11 : i64} {
  func.func @_gate_kernel(%arg0: i32, %arg1: i32, %arg2: memref<1x4x256xf32, #tpu.memory_space<vmem>>, %arg3: memref<1x1x256xf32, #tpu.memory_space<vmem>>, %arg4: memref<2xf32, #tpu.memory_space<smem>>, %arg5: memref<1x4x256xf32, #tpu.memory_space<vmem>>) attributes {dimension_semantics = [#tpu.dimension_semantics<parallel>, #tpu.dimension_semantics<parallel>], iteration_bounds = array<i64: 2, 1>, scalar_prefetch = 0 : i64, scratch_operands = 0 : i64, tpu.core_type = #tpu.core_type<tc>, window_params = [{transform_indices = @transform_0, window_bounds = array<i64: 1, 4, 256>}, {transform_indices = @transform_1, window_bounds = array<i64: 1, 1, 256>}, {transform_indices = @transform_2, window_bounds = array<i64: 2>}, {transform_indices = @transform_3, window_bounds = array<i64: 1, 4, 256>}]} {
    %c0 = arith.constant 0 : index
    %c0_0 = arith.constant 0 : index
    %c0_1 = arith.constant 0 : index
    %0 = vector.load %arg2[%c0, %c0_0, %c0_1] : memref<1x4x256xf32, #tpu.memory_space<vmem>>, vector<1x4x256xf32>
    %1 = vector.shape_cast %0 : vector<1x4x256xf32> to vector<4x256xf32>
    %c0_2 = arith.constant 0 : index
    %c0_3 = arith.constant 0 : index
    %c0_4 = arith.constant 0 : index
    %2 = vector.load %arg3[%c0_2, %c0_3, %c0_4] : memref<1x1x256xf32, #tpu.memory_space<vmem>>, vector<1x1x256xf32>
    %3 = vector.shape_cast %2 : vector<1x1x256xf32> to vector<1x256xf32>
    %c0_5 = arith.constant 0 : index
    %4 = memref.load %arg4[%c0_5] : memref<2xf32, #tpu.memory_space<smem>>
    %5 = vector.broadcast %4 : f32 to vector<1x256xf32>
    %6 = arith.mulf %3, %5 : vector<1x256xf32>
    %c1 = arith.constant 1 : index
    %7 = memref.load %arg4[%c1] : memref<2xf32, #tpu.memory_space<smem>>
    %8 = vector.broadcast %7 : f32 to vector<1x256xf32>
    %9 = arith.addf %6, %8 : vector<1x256xf32>
    %10 = arith.negf %9 : vector<1x256xf32>
    %11 = math.exp %10 : vector<1x256xf32>
    %cst = arith.constant 1.000000e+00 : f32
    %12 = vector.broadcast %cst : f32 to vector<1x256xf32>
    %13 = arith.addf %12, %11 : vector<1x256xf32>
    %14 = arith.divf %12, %13 : vector<1x256xf32>
    %15 = vector.broadcast %14 : vector<1x256xf32> to vector<4x256xf32>
    %16 = arith.mulf %1, %15 : vector<4x256xf32>
    %c0_6 = arith.constant 0 : index
    %c0_7 = arith.constant 0 : index
    %c0_8 = arith.constant 0 : index
    %17 = vector.load %arg5[%c0_6, %c0_7, %c0_8] : memref<1x4x256xf32, #tpu.memory_space<vmem>>, vector<1x4x256xf32>
    %18 = vector.shape_cast %17 : vector<1x4x256xf32> to vector<4x256xf32>
    %19 = vector.shape_cast %16 : vector<4x256xf32> to vector<1x4x256xf32>
    tpu.vector_store %arg5[%c0_6, %c0_7, %c0_8], %19 {strides = array<i32>} : memref<1x4x256xf32, #tpu.memory_space<vmem>>, vector<1x4x256xf32>,
    return
  }
  func.func @transform_0(%arg0: i32, %arg1: i32) -> (i32, i32, i32) {
    %c0_i32 = arith.constant 0 : i32
    %c0_i32_0 = arith.constant 0 : i32
    return %arg0, %c0_i32, %arg1 : i32, i32, i32
  }
  func.func @transform_1(%arg0: i32, %arg1: i32) -> (i32, i32, i32) {
    %c0_i32 = arith.constant 0 : i32
    %c0_i32_0 = arith.constant 0 : i32
    return %arg0, %c0_i32, %arg1 : i32, i32, i32
  }
  func.func @transform_2(%arg0: i32, %arg1: i32) -> i32 {
    %c0_i32 = arith.constant 0 : i32
    %c0_i32_0 = arith.constant 0 : i32
    return %c0_i32 : i32
  }
  func.func @transform_3(%arg0: i32, %arg1: i32) -> (i32, i32, i32) {
    %c0_i32 = arith.constant 0 : i32
    %c0_i32_0 = arith.constant 0 : i32
    return %arg0, %c0_i32, %arg1 : i32, i32, i32
  }
}

</mosaic_0001>

<bundles_post_ra>
// kernel: attn_block.5
= control target key start
LH: loop header
LB: loop body
LE: loop exit
PB: predicated region body
PF: predicated region fallthrough
CT: control target
= control target key end

     0   :  { %8 = vsyncpa [#allocation3], 0  ;;  %s519_s12 = smov 0   ;;  %s521_s13 = smov 0   ;;  %s581_s0 = inlined_call_operand.vmem [shape: f32[2,4,256], index: 0, kind: input, shape index: {}]   ;;  %s582_s1 = inlined_call_operand.vmem [shape: f32[2,1,256], index: 1, kind: input, shape index: {}]   ;;  %s583_s2 = inlined_call_operand.vmem [shape: f32[2], index: 2, kind: input, shape index: {}]   ;;  %s584_s3 = inlined_call_operand.vmem [shape: f32[2,4,256], index: 3, kind: output, shape index: {}]  }
   0x1   :  { %s523_s14 = smov 0  }
   0x2 LB: > { %s398_s15 = sadd.s32 4294967295, %s496_s14   ;;  %s26_s16 = sadd.s32 1, %s492_s13  ;;  %s496_s14 = sphi %s523_s14, %s14_s14   ;;  %s492_s13 = sphi %s521_s13, %s588_s13   ;;  %s488_s12 = sphi %s519_s12, %s587_s12  }
   0x3   : > { %p28_p0 = scmp.ge.s32.totalorder %s26_s16, 2  ;;  %p400_p1 = scmp.ge.s32.totalorder %s496_s14, 1 }
   0x4   : > { %p136_p2 = scmp.lt.s32.totalorder %s496_s14, 3  ;;  %p544_p4 = scmp.eq.s32.totalorder %s398_s15, 0 }
   0x5   : > { %s590_s16 = smov (%p28_p0, %s26_s16), 0  ;;  %s149_s21 = sshll.u32 %s583_s2, 4  ;;  %s150_s21 = int_to_ptr.vmem [resolvable:$true] %s149_s21 }
   0x6   : > { %p540_p3 = pnand %p400_p1, %p136_p2  ;;  %s455_s22 = scalar_lea.vmem %s150_s21, 16 }
   0x7   : > { %p456_p7 = scmp.ne.s32.totalorder %s150_s21, %s455_s22  ;;  %p463_p11 = scmp.lt.s32.totalorder %s150_s21, %s150_s21 }
   0x8   : > { %p420_p5 = pneg %p540_p3  ;;  %p464_p12 = scmp.lt.s32.totalorder %s455_s22, %s455_s22 }
   0xa   : > { %p421_p6 = pnand %p544_p4, %p420_p5  ;;  %p465_p13 = por %p464_p12, %p463_p11 }
   0xc   : > { %p457_p8 = pneg %p421_p6 }
   0xe   : > { %p458_p9 = pnand %p457_p8, %p456_p7 }
  0x10   : > { %p459_p10 = pneg %p458_p9 }
  0x12   : > { %p466_p0 = pnand %p465_p13, %p459_p10 }
  0x14   : > { %469 = shalt.err (!%p466_p0)
}
  0x15   : > { %s498_s23 = smov [#allocation2]   ;;  %187 = sbr.rel (%p540_p3) target bundleno = 79 (0x4f), region = 32 }
  0x16   : > { %423 = dma.vmem_to_smem (!%p421_p6), %s150_s21, 16, %s498_s23, [#allocation3]  }
  0x1a   : > { %483 = dma.done.wait (%p544_p4), [#allocation3], 16  }
  0x1b   : > { %485 = vsyncadd (%p544_p4), [#allocation3], 4294967280 }
  0x1c   : > { %193 = sfence }
  0x1d   : > { %p229_p1 = scmp.lt.s32.totalorder %s488_s12, 1  ;;  %s259_s24 = sld [smem:[#allocation2]]  ;;  %v272_v8 = vlaneseq }
  0x1e   : > { %s410_s25 = sld [smem:[#allocation2 + $0x1]] }
  0x1f   : > { %s592_s12 = smov (!%p229_p1, %s488_s12), 1  ;;  %v273_v9 = vshrl.u32 %v272_v8, 7 }
  0x20   : > { %s407_s26 = sshll.u32 %s592_s12, 1  ;;  %s414_s30 = sshll.u32 %s592_s12, 3 }
  0x21   : > { %s245_s29 = scalar_lea.vmem %s582_s1, %s407_s26  ;;  %v274_v10 = vsub.s32 0, %v273_v9  ;;  %v278_v11 = vsub.s32 1, %v273_v9  ;;  %s236_s6 = scalar_lea.vmem %s581_s0, %s414_s30 }
  0x22   : > { %v258_v0 = vld [vmem:[%s245_s29] sm:$0x3]  ;;  %s255_s9 = scalar_lea.vmem %s584_s3, %s414_s30 }
  0x23   : > { %v260_v1 = vstv %s259_s24  ;;  %v257_v15 = vld [vmem:[%s236_s6] sm:$0xff] }
  0x24   : > { %v261_v2 = vmul.f32 %v260_v1, %v258_v0  ;;  %v263_v3 = vstv %s410_s25 }
  0x26   : > { %v264_v4 = vadd.f32 %v263_v3, %v261_v2 }
  0x28   : > { %v411_v5 = vmul.f32 -1.442695, %v264_v4 }
  0x2a   : > { %451 = vpow2.f32 %v411_v5 }
  0x37   : > { %v452_v6 = vpop.eup %451 }
  0x38   : > { %v268_v7 = vadd.f32 1.0, %v452_v6 }
  0x3a   : > { %453 = vrcp.f32 %v268_v7 }
  0x47   : > { %v454_v12 = vpop.eup %453 }
  0x48   : > { %v275_v13 = vrot.slane %v454_v12, %v274_v10  ;;  %v279_v14 = vrot.slane %v454_v12, %v278_v11 }
  0x4a   : > { %v280_v16 = vcombine.low %v275_v13, %v279_v14 }
  0x4c   : > { %v282_v17 = vmul.f32 %v280_v16, %v257_v15 }
  0x4e   : > { %283 = vst [vmem:[%s255_s9] sm:$0xff] %v282_v17 }
  0x4f PF: > { %s14_s14 = sadd.s32 1, %s496_s14   ;;  %s587_s12 = smov %s492_s13 }
  0x50   : > { %p11_p2 = scmp.ge.s32.totalorder %s14_s14, 4   ;;  %s588_s13 = smov %s590_s16 }
  0x52   :  { %13 = sbr.rel (!%p11_p2) target bundleno = 2 (0x2), region = 70 }
  0x57   :  { %314 = vsyncpa [#allocation3], 1 }
  0x58   :  { %316 = vsyncpa [#allocation3 + $0x1], 1 }

// kernel: attn_block.3
= control target key start
LH: loop header
LB: loop body
LE: loop exit
PB: predicated region body
PF: predicated region fallthrough
CT: control target
= control target key end

     0   :  { %s639_s15 = smov 0   ;;  %s641_s16 = smov 0   ;;  %s690_s0 = inlined_call_operand.vmem [shape: f32[2,4,256], index: 0, kind: input, shape index: {}]   ;;  %s691_s1 = inlined_call_operand.vmem [shape: f32[2,4,256], index: 1, kind: input, shape index: {}]   ;;  %s692_s2 = inlined_call_operand.vmem [shape: f32[8,4], index: 2, kind: input, shape index: {}]   ;;  %s693_s3 = inlined_call_operand.vmem [shape: f32[8,4], index: 3, kind: input, shape index: {}]   ;;  %s694_s4 = inlined_call_operand.vmem [shape: f32[2,8,4], index: 4, kind: output, shape index: {}]  }
   0x1   :  { %s643_s17 = smov 0  }
   0x2 LB: > { %s26_s18 = sadd.s32 1, %s607_s16  ;;  %p546_p0 = scmp.ge.s32.totalorder %s611_s17, 1  ;;  %s611_s17 = sphi %s643_s17, %s14_s17   ;;  %s607_s16 = sphi %s641_s16, %s696_s16   ;;  %s603_s15 = sphi %s639_s15, %s695_s15  }
   0x3   : > { %p28_p1 = scmp.ge.s32.totalorder %s26_s18, 2  ;;  %p198_p2 = scmp.lt.s32.totalorder %s611_s17, 3 }
   0x5   : > { %s698_s18 = smov (%p28_p1, %s26_s18), 0  ;;  %p199_p3 = pnand %p546_p0, %p198_p2 }
   0x6   : > { %p237_p4 = scmp.lt.s32.totalorder (!%p199_p3), %s603_s15, 1 }
   0x7   : > { %202 = sbr.rel (%p199_p3) target bundleno = 365 (0x16d), region = 36 }
   0xc   : > { %v613_v0 = vmov 0.0   ;;  %s700_s15 = smov (!%p237_p4, %s603_s15), 1  ;;  %vm264_vm0 = vcmask 31744   ;;  %vm275_vm1 = vcmask 1043456   ;;  %v268_v5 = vld [vmem:[%s692_s2] sm:$0xff]  ;;  %vm448_vm2 = vcmask 7168  }
   0xd   : > { %344 = vmatprep.mubr.f32.mxu0 %v613_v0  ;;  %425 = vmatprep.mubr.f32.mxu1 %v613_v0  ;;  %s560_s19 = sshll.u32 %s700_s15, 3  ;;  %v351_v6 = vld [vmem:[%s693_s3] sm:$0xff]  ;;  %vm450_vm3 = vcmask 15360   ;;  %vm452_vm4 = vcmask 23552  }
   0xe   : > { %s244_s22 = scalar_lea.vmem %s690_s0, %s560_s19  ;;  %s663_s25 = scalar_lea.vmem %s694_s4, %s560_s19 }
   0xf   : > { %v266_v1 = vld [vmem:[%s244_s22] sm:$0xff]  ;;  %s254_s28 = scalar_lea.vmem %s691_s1, %s560_s19  ;;  %265 = vst.msk [vmem:[%s663_s25] sm:$0xff] %vm264_vm0, %v613_v0 }
  0x10   : > { %v270_v2 = vcombine.high %v266_v1, %v266_v1  ;;  %v267_v3 = vld [vmem:[%s254_s28] sm:$0xff] }
  0x11   : > { %v353_v4 = vcombine.high %v267_v3, %v267_v3 }
  0x12   : > { %552 = vmatprep.subr.msk.mxu0 %vm275_vm1, %v270_v2 }
  0x13   : > { %555 = vmatprep.subr.msk.mxu1 %vm275_vm1, %v353_v4  ;;  %553 = vmatpush1.msk.msra.mxu0 %vm275_vm1, %v266_v1 }
  0x14   : > { %556 = vmatpush1.msk.msra.mxu1 %vm275_vm1, %v267_v3  ;;  %554 = vmatmul.mubr.msk.f32.vlgmr.msra.gmra.mxu0 %vm264_vm0, %v268_v5 }
  0x15   : > { %557 = vmatmul.mubr.msk.f32.vlgmr.msra.gmra.mxu1 %vm264_vm0, %v351_v6 }
  0x16   : > { %v454_v22 = vld [vmem:[%s663_s25] sm:$0xff] }
  0xd4   : > { %v346_v7 = vpop.f32.mrf.mxu0 }
  0xd5   : > { %v427_v8 = vpop.f32.mrf.mxu1  ;;  %v435_v16 = vmul.f32 %v346_v7, %v346_v7 }
  0xd6   : > { %v348_v9 = vpop.f32.mrf.mxu0  ;;  %v443_v13 = vmul.f32 %v427_v8, %v427_v8 }
  0xd7   : > { %v436_v10 = vmul.f32 %v348_v9, %v348_v9  ;;  %v429_v11 = vpop.f32.mrf.mxu1  ;;  %v432_v12 = vadd.f32 %v348_v9, %v346_v7 }
  0xd8   : > { %v444_v14 = vmul.f32 %v429_v11, %v429_v11  ;;  %v440_v15 = vadd.f32 %v429_v11, %v427_v8 }
  0xd9   : > { %433 = vadd.xlane.f32.xlu0 %v432_v12  ;;  %v437_v17 = vadd.f32 %v436_v10, %v435_v16 }
  0xda   : > { %441 = vadd.xlane.f32.xlu1 %v440_v15  ;;  %v445_v18 = vadd.f32 %v444_v14, %v443_v13 }
  0xdd   : > { %438 = vadd.xlane.f32.xlu0 %v437_v17 }
  0xde   : > { %446 = vadd.xlane.f32.xlu1 %v445_v18 }
 0x162   : > { %v434_v19 = vpop.xlane.xlu0 %433 }
 0x163   : > { %v442_v20 = vpop.xlane.xlu1 %441 }
 0x166   : > { %v439_v21 = vpop.xlane.xlu0 %438 }
 0x167   : > { %v449_v23 = vsel %vm448_vm2, %v434_v19, %v439_v21  ;;  %v447_v24 = vpop.xlane.xlu1 %446 }
 0x168   : > { %v451_v25 = vsel %vm450_vm3, %v449_v23, %v442_v20 }
 0x169   : > { %v453_v26 = vsel %vm452_vm4, %v451_v25, %v447_v24 }
 0x16a   : > { %v455_v27 = vadd.f32 %v454_v22, %v453_v26 }
 0x16c   : > { %456 = vst.msk [vmem:[%s663_s25] sm:$0xff] %vm264_vm0, %v455_v27 }
 0x16d PF: > { %s14_s17 = sadd.s32 1, %s611_s17   ;;  %s695_s15 = smov %s607_s16 }
 0x16e   : > { %p11_p5 = scmp.ge.s32.totalorder %s14_s17, 4   ;;  %s696_s16 = smov %s698_s18 }
 0x170   :  { %13 = sbr.rel (!%p11_p5) target bundleno = 2 (0x2), region = 73 }

// kernel: attn_block.4
= control target key start
LH: loop header
LB: loop body
LE: loop exit
PB: predicated region body
PF: predicated region fallthrough
CT: control target
= control target key end

     0   :  { %s841_s24 = smov 0   ;;  %s843_s25 = smov 0   ;;  %s904_s0 = inlined_call_operand.vmem [shape: f32[2,4,256], index: 0, kind: input, shape index: {}]   ;;  %s905_s1 = inlined_call_operand.vmem [shape: f32[2,4,256], index: 1, kind: input, shape index: {}]   ;;  %s906_s2 = inlined_call_operand.vmem [shape: f32[8,4], index: 2, kind: input, shape index: {}]   ;;  %s907_s3 = inlined_call_operand.vmem [shape: f32[8,4], index: 3, kind: input, shape index: {}]   ;;  %s908_s4 = inlined_call_operand.vmem [shape: f32[8,1], index: 4, kind: input, shape index: {}]   ;;  %s909_s5 = inlined_call_operand.vmem [shape: f32[8,1], index: 5, kind: input, shape index: {}]   ;;  %s910_s6 = inlined_call_operand.vmem [shape: f32[2,1,256], index: 6, kind: output, shape index: {0}]   ;;  %s911_s7 = inlined_call_operand.vmem [shape: f32[2,1,2], index: 7, kind: output, shape index: {1}]  }
   0x1   :  { %s845_s26 = smov 0  }
   0x2 LB: > { %s30_s27 = sadd.s32 1, %s792_s25  ;;  %p728_p0 = scmp.ge.s32.totalorder %s796_s26, 1  ;;  %s796_s26 = sphi %s845_s26, %s18_s26   ;;  %s792_s25 = sphi %s843_s25, %s913_s25   ;;  %s788_s24 = sphi %s841_s24, %s912_s24  }
   0x3   : > { %p32_p1 = scmp.ge.s32.totalorder %s30_s27, 2  ;;  %p278_p2 = scmp.lt.s32.totalorder %s796_s26, 3 }
   0x5   : > { %s915_s27 = smov (%p32_p1, %s30_s27), 0  ;;  %p279_p3 = pnand %p728_p0, %p278_p2 }
   0x6   : > { %p330_p4 = scmp.lt.s32.totalorder (!%p279_p3), %s788_s24, 1 }
   0x7   : > { %282 = sbr.rel (%p279_p3) target bundleno = 384 (0x180), region = 44 }
   0xc   : > { %v798_v0 = vmov 0.0   ;;  %v533_v1 = vld [vmem:[%s908_s4] sm:$0xff]  ;;  %s917_s24 = smov (!%p330_p4, %s788_s24), 1  ;;  %v799_v2 = vmov 0   ;;  %vm365_vm0 = vcmask 8192   ;;  %vm377_vm1 = vcmask 1043456  }
   0xd   : > { %446 = vmatprep.mubr.f32.mxu0 %v798_v0  ;;  %526 = vmatprep.mubr.f32.mxu1 %v798_v0  ;;  %s742_s30 = sshll.u32 %s917_s24, 3  ;;  %v543_v3 = vld [vmem:[%s909_s5] sm:$0xff]  ;;  %s878_s18 = scalar_lea.vmem %s911_s7, %s917_s24  ;;  %vm373_vm2 = vcmask 31744   ;;  %v800_v29 = vmov 1966171168   ;;  %v569_v31 = vlaneseq  ;;  %vm594_vm4 = vcmask 7168  }
   0xe   : > { %771 = vset.pattern.permute.xlu0 %v799_v2  ;;  %s347_s12 = scalar_lea.vmem %s905_s1, %s742_s30  ;;  %s337_s15 = scalar_lea.vmem %s904_s0, %s742_s30  ;;  %366 = vst.msk [vmem:[%s878_s18] sm:$0x1] %vm365_vm0, %v798_v0  ;;  %v370_v8 = vld [vmem:[%s907_s3] sm:$0xff]  ;;  %v567_v30 = vunpack.c.l.s4 %v800_v29 }
   0xf   : > { %536 = vperm.xlu0 %771, %v533_v1   ;;  %v368_v4 = vld [vmem:[%s347_s12] sm:$0xff]  ;;  %v570_v37 = vshrl.u32 %v569_v31, 7  ;;  %s733_s23 = sshll.u32 %s917_s24, 1  ;;  %vm583_vm3 = vcmp.lt.s32.totalorder %v569_v31, 256 }
  0x10   : > { %v372_v5 = vcombine.high %v368_v4, %v368_v4  ;;  %v367_v6 = vld [vmem:[%s337_s15] sm:$0xff]  ;;  %v568_v36 = vunpack.c.0.s8 %v567_v30  ;;  %s356_s30 = scalar_lea.vmem %s910_s6, %s733_s23 }
  0x11   : > { %v454_v7 = vcombine.high %v367_v6, %v367_v6  ;;  %v369_v9 = vld [vmem:[%s906_s2] sm:$0xff] }
  0x12   : > { %734 = vmatprep.subr.msk.mxu0 %vm377_vm1, %v372_v5  ;;  %v571_v41 = vsub.s32 %v568_v36, %v570_v37 }
  0x13   : > { %546 = vperm.xlu0 %771, %v543_v3   ;;  %737 = vmatprep.subr.msk.mxu1 %vm377_vm1, %v454_v7 }
  0x14   : > { %735 = vmatpush1.msk.msra.mxu0 %vm377_vm1, %v368_v4  ;;  %738 = vmatpush1.msk.msra.mxu1 %vm377_vm1, %v367_v6 }
  0x15   : > { %736 = vmatmul.mubr.msk.f32.vlgmr.msra.gmra.mxu0 %vm373_vm2, %v370_v8  ;;  %739 = vmatmul.mubr.msk.f32.vlgmr.msra.gmra.mxu1 %vm373_vm2, %v369_v9  ;;  %v596_v50 = vld [vmem:[%s878_s18] sm:$0x1] }
  0x8a   : > { %v537_v11 = vpop.permute.xlu0 %536 }
  0x8e   : > { %v547_v20 = vpop.permute.xlu0 %546 }
  0xd5   : > { %v448_v10 = vpop.f32.mrf.mxu0  ;;  %v528_v12 = vpop.f32.mrf.mxu1 }
  0xd6   : > { %v529_v13 = vadd.f32 %v528_v12, %v448_v10 }
  0xd7   : > { %v450_v14 = vpop.f32.mrf.mxu0  ;;  %v530_v15 = vpop.f32.mrf.mxu1 }
  0xd8   : > { %v539_v16 = vadd.f32 %v537_v11, %v529_v13  ;;  %v531_v17 = vadd.f32 %v530_v15, %v450_v14 }
  0xda   : > { %v540_v18 = vadd.f32 %v537_v11, %v531_v17  ;;  %v541_v19 = vmax.f32 %v539_v16, 0.0 }
  0xdc   : > { %v542_v21 = vmax.f32 %v540_v18, 0.0  ;;  %v549_v22 = vmul.f32 %v547_v20, %v541_v19 }
  0xde   : > { %v550_v23 = vmul.f32 %v547_v20, %v542_v21  ;;  %v551_v24 = vrot.slane %v549_v22, 4 }
  0xe0   : > { %v552_v25 = vadd.f32 %v551_v24, %v549_v22  ;;  %v557_v26 = vrot.slane %v550_v23, 4 }
  0xe2   : > { %v553_v27 = vrot.slane %v552_v25, 2  ;;  %v558_v28 = vadd.f32 %v557_v26, %v550_v23 }
  0xe4   : > { %v554_v32 = vadd.f32 %v553_v27, %v552_v25  ;;  %v559_v33 = vrot.slane %v558_v28, 2 }
  0xe6   : > { %v560_v34 = vadd.f32 %v559_v33, %v558_v28  ;;  %v555_v35 = vrot.slane %v554_v32, 1 }
  0xe8   : > { %v561_v38 = vrot.slane %v560_v34, 1  ;;  %v556_v39 = vadd.f32 %v555_v35, %v554_v32 }
  0xea   : > { %v562_v40 = vadd.f32 %v561_v38, %v560_v34  ;;  %v589_v46 = vmul.f32 %v556_v39, %v556_v39 }
  0xec   : > { %v586_v42 = vadd.f32 %v562_v40, %v556_v39  ;;  %v565_v43 = vcombine.low %v556_v39, %v562_v40  ;;  %v590_v44 = vmul.f32 %v562_v40, %v562_v40 }
  0xee   : > { %587 = vadd.xlane.f32.xlu1 %v586_v42  ;;  %v572_v45 = vrot.slane %v565_v43, %v571_v41  ;;  %v591_v48 = vadd.f32 %v590_v44, %v589_v46 }
  0xf0   : > { %v579_v47 = vrot.slane %v572_v45, %v571_v41 }
  0xf2   : > { %585 = vst.msk [vmem:[%s356_s30] sm:$0x3] %vm583_vm3, %v579_v47  ;;  %592 = vadd.xlane.f32.xlu1 %v591_v48 }
 0x177   : > { %v588_v49 = vpop.xlane.xlu1 %587 }
 0x17b   : > { %v593_v51 = vpop.xlane.xlu1 %592 }
 0x17c   : > { %v595_v52 = vsel %vm594_vm4, %v588_v49, %v593_v51 }
 0x17d   : > { %v597_v53 = vadd.f32 %v596_v50, %v595_v52 }
 0x17f   : > { %599 = vst.msk [vmem:[%s878_s18] sm:$0x1] %vm365_vm0, %v597_v53 }
 0x180 PF: > { %s18_s26 = sadd.s32 1, %s796_s26   ;;  %s912_s24 = smov %s792_s25 }
 0x181   : > { %p15_p5 = scmp.ge.s32.totalorder %s18_s26, 4   ;;  %s913_s25 = smov %s915_s27 }
 0x183   :  { %17 = sbr.rel (!%p15_p5) target bundleno = 2 (0x2), region = 93 }

</bundles_post_ra>
